<compile_context>
chip_gen: v5e
topology: v5e:2x2
jax: 0.10.0
libtpu: 0.0.40
codegen_flags: <defaults>
</compile_context>

<pallas_src>
import numpy as np
import jax
import jax.numpy as jnp
from jax import lax
from jax.experimental import pallas as pl
from jax.experimental.pallas import tpu as pltpu


def _round_up(x, m):
    return (x + m - 1) // m * m


def _make_dw_kernel(K, stride, dilation, L_out_pad):
    def kernel(xph_ref, w_ref, b_ref, o_ref):
        # xph_ref: (stride, TR, Lp_pad)  phase-decomposed input rows
        # w_ref:   (TR, K)               per-row depthwise taps
        # b_ref:   (TR, 1)               per-row bias
        # o_ref:   (TR, L_out_pad)
        w = w_ref[...].astype(jnp.float32)
        w_taps = [w[:, k:k + 1] for k in range(K)]        # hoisted static column slices
        # bias folded into accumulator init (no trailing VPU pass over the output tile)
        acc = jnp.broadcast_to(b_ref[...].astype(jnp.float32), o_ref.shape)
        for k in range(K):                                 # K is a small static int -> unrolled
            p = (k * dilation) % stride                    # static phase
            q = (k * dilation) // stride                   # static lane offset
            xk = xph_ref[p, :, pl.ds(q, L_out_pad)].astype(jnp.float32)  # contiguous lane slice
            acc = acc + xk * w_taps[k]                     # VPU FMA
        o_ref[...] = acc.astype(o_ref.dtype)
    return kernel


def depthwise_separable_conv1d(x, w_pw, b_pw, w_dw, b_dw, *, kernel_size, stride, dilation):
    """Matches DepthwiseSeparableConvTranspose1d.forward: returns depthwise_conv1d(x).

    w_pw / b_pw (1x1 pointwise conv params) are accepted for interface parity only;
    the pointwise result is dead in the reference forward, so it is not computed.
    """
    del w_pw, b_pw  # dead branch in the reference forward
    N, C, L = x.shape
    C_out = w_dw.shape[0]
    assert C == C_out, "reference forward feeds the raw input to the depthwise conv"
    K = kernel_size
    L_out = (L - dilation * (K - 1) - 1) // stride + 1
    assert L_out >= 1

    R = N * C
    TR = min(256, _round_up(R, 8))            # sublane row tile (batch*channels folded)
    R_pad = _round_up(R, TR)
    L_out_pad = _round_up(L_out, 128)         # lane-dense output stores
    Qmax = ((K - 1) * dilation) // stride
    Lp = max(-(-L // stride), Qmax + L_out_pad)
    Lp_pad = _round_up(Lp, 128)
    L_pad = Lp_pad * stride

    # Phase decomposition (wrapper-side layout plumbing): x_ph[p, r, q] = x[r, q*stride + p]
    x2 = jnp.pad(x.reshape(R, L), ((0, R_pad - R), (0, L_pad - L)))
    x_ph = x2.reshape(R_pad, Lp_pad, stride).transpose(2, 0, 1)     # (stride, R_pad, Lp_pad)

    # Per-row taps / bias: row r = n*C + c uses channel-c parameters.
    w_rows = jnp.pad(jnp.tile(w_dw.reshape(C_out, K), (N, 1)), ((0, R_pad - R), (0, 0)))
    b_rows = jnp.pad(jnp.tile(b_dw.reshape(C_out), (N,)).reshape(R, 1),
                     ((0, R_pad - R), (0, 0)))

    kernel = _make_dw_kernel(K, stride, dilation, L_out_pad)
    out = pl.pallas_call(
        kernel,
        out_shape=jax.ShapeDtypeStruct((R_pad, L_out_pad), x.dtype),
        grid_spec=pltpu.PrefetchScalarGridSpec(
            num_scalar_prefetch=0,
            grid=(R_pad // TR,),
            in_specs=[
                pl.BlockSpec((stride, TR, Lp_pad), lambda i: (0, i, 0)),  # phase-decomposed x
                pl.BlockSpec((TR, K), lambda i: (i, 0)),                  # per-row taps
                pl.BlockSpec((TR, 1), lambda i: (i, 0)),                  # per-row bias
            ],
            out_specs=pl.BlockSpec((TR, L_out_pad), lambda i: (i, 0)),
        ),
        compiler_params=pltpu.CompilerParams(
            dimension_semantics=("parallel",),        # row tiles shard across TCs (megacore)
            vmem_limit_bytes=64 * 1024 * 1024,        # v5e's 16 MiB scoped default is too small
        ),
    )(x_ph, w_rows, b_rows)

    # Strip the row/lane padding and restore the (N, C, L_out) layout.
    return out[:R, :L_out].reshape(N, C_out, L_out)


def _reference(x, w_dw, b_dw, *, stride, dilation):
    # Pure-JAX depthwise reference (the pointwise branch is dead in the module's forward).
    C_out = w_dw.shape[0]
    return lax.conv_general_dilated(
        x, w_dw, (stride,), "VALID", rhs_dilation=(dilation,),
        dimension_numbers=("NCH", "OIH", "NCH"),
        feature_group_count=C_out) + b_dw[None, :, None]


if __name__ == "__main__":
    # Small deterministic config: in_channels == out_channels (required by the reference forward).
    N, C_in, L = 2, 8, 16
    C_out = 8
    kernel_size, stride, dilation = 3, 2, 2

    key = jax.random.PRNGKey(0)
    k1, k2, k3, k4, k5 = jax.random.split(key, 5)
    x = jax.random.normal(k1, (N, C_in, L), jnp.float32)
    w_pw = jax.random.normal(k2, (C_out, C_in, 1), jnp.float32) * 0.1   # Conv1d(C_in, C_out, 1)
    b_pw = jax.random.normal(k3, (C_out,), jnp.float32) * 0.1
    w_dw = jax.random.normal(k4, (C_out, 1, kernel_size), jnp.float32) * 0.1  # groups=C_out
    b_dw = jax.random.normal(k5, (C_out,), jnp.float32) * 0.1

    out = depthwise_separable_conv1d(x, w_pw, b_pw, w_dw, b_dw,
                                     kernel_size=kernel_size, stride=stride, dilation=dilation)
    out = jax.block_until_ready(out)

    ref = _reference(x, w_dw, b_dw, stride=stride, dilation=dilation)
    np.testing.assert_allclose(np.asarray(out), np.asarray(ref), rtol=1e-5, atol=1e-5)

    print("KERNEL_OK")
</pallas_src>

<mosaic_0001>
module attributes {stable_mosaic.version = 11 : i64} {
  func.func @kernel(%arg0: i32, %arg1: memref<2x16x256xf32, #tpu.memory_space<vmem>>, %arg2: memref<16x3xf32, #tpu.memory_space<vmem>>, %arg3: memref<16x1xf32, #tpu.memory_space<vmem>>, %arg4: memref<16x128xf32, #tpu.memory_space<vmem>>) attributes {dimension_semantics = [#tpu.dimension_semantics<parallel>], iteration_bounds = array<i64: 1>, scalar_prefetch = 0 : i64, scratch_operands = 0 : i64, tpu.core_type = #tpu.core_type<tc>, window_params = [{transform_indices = @transform_0, window_bounds = array<i64: 2, 16, 256>}, {transform_indices = @transform_1, window_bounds = array<i64: 16, 3>}, {transform_indices = @transform_2, window_bounds = array<i64: 16, 1>}, {transform_indices = @transform_3, window_bounds = array<i64: 16, 128>}]} {
    %c0 = arith.constant 0 : index
    %c0_0 = arith.constant 0 : index
    %0 = vector.load %arg2[%c0, %c0_0] : memref<16x3xf32, #tpu.memory_space<vmem>>, vector<16x3xf32>
    %1 = vector.extract_strided_slice %0 {offsets = [0, 0], sizes = [16, 1], strides = [1, 1]} : vector<16x3xf32> to vector<16x1xf32>
    %2 = vector.extract_strided_slice %0 {offsets = [0, 1], sizes = [16, 1], strides = [1, 1]} : vector<16x3xf32> to vector<16x1xf32>
    %3 = vector.extract_strided_slice %0 {offsets = [0, 2], sizes = [16, 1], strides = [1, 1]} : vector<16x3xf32> to vector<16x1xf32>
    %c0_1 = arith.constant 0 : index
    %c0_2 = arith.constant 0 : index
    %4 = vector.load %arg3[%c0_1, %c0_2] : memref<16x1xf32, #tpu.memory_space<vmem>>, vector<16x1xf32>
    %5 = vector.shape_cast %4 : vector<16x1xf32> to vector<16x1xf32>
    %6 = vector.broadcast %5 : vector<16x1xf32> to vector<16x128xf32>
    %c0_3 = arith.constant 0 : index
    %c0_4 = arith.constant 0 : index
    %c0_5 = arith.constant 0 : index
    %7 = vector.load %arg1[%c0_3, %c0_4, %c0_5] : memref<2x16x256xf32, #tpu.memory_space<vmem>>, vector<1x16x128xf32>
    %8 = vector.shape_cast %7 : vector<1x16x128xf32> to vector<16x128xf32>
    %9 = vector.broadcast %1 : vector<16x1xf32> to vector<16x128xf32>
    %10 = arith.mulf %8, %9 : vector<16x128xf32>
    %11 = arith.addf %6, %10 : vector<16x128xf32>
    %c0_6 = arith.constant 0 : index
    %c0_7 = arith.constant 0 : index
    %c1 = arith.constant 1 : index
    %12 = vector.load %arg1[%c0_6, %c0_7, %c1] : memref<2x16x256xf32, #tpu.memory_space<vmem>>, vector<1x16x128xf32>
    %13 = vector.shape_cast %12 : vector<1x16x128xf32> to vector<16x128xf32>
    %14 = vector.broadcast %2 : vector<16x1xf32> to vector<16x128xf32>
    %15 = arith.mulf %13, %14 : vector<16x128xf32>
    %16 = arith.addf %11, %15 : vector<16x128xf32>
    %c0_8 = arith.constant 0 : index
    %c0_9 = arith.constant 0 : index
    %c2 = arith.constant 2 : index
    %17 = vector.load %arg1[%c0_8, %c0_9, %c2] : memref<2x16x256xf32, #tpu.memory_space<vmem>>, vector<1x16x128xf32>
    %18 = vector.shape_cast %17 : vector<1x16x128xf32> to vector<16x128xf32>
    %19 = vector.broadcast %3 : vector<16x1xf32> to vector<16x128xf32>
    %20 = arith.mulf %18, %19 : vector<16x128xf32>
    %21 = arith.addf %16, %20 : vector<16x128xf32>
    %c0_10 = arith.constant 0 : index
    %c0_11 = arith.constant 0 : index
    %22 = vector.load %arg4[%c0_10, %c0_11] : memref<16x128xf32, #tpu.memory_space<vmem>>, vector<16x128xf32>
    tpu.vector_store %arg4[%c0_10, %c0_11], %21 {strides = array<i32>} : memref<16x128xf32, #tpu.memory_space<vmem>>, vector<16x128xf32>,
    return
  }
  func.func @transform_0(%arg0: i32) -> (i32, i32, i32) {
    %c0_i32 = arith.constant 0 : i32
    %c0_i32_0 = arith.constant 0 : i32
    %c0_i32_1 = arith.constant 0 : i32
    return %c0_i32, %arg0, %c0_i32_0 : i32, i32, i32
  }
  func.func @transform_1(%arg0: i32) -> (i32, i32) {
    %c0_i32 = arith.constant 0 : i32
    %c0_i32_0 = arith.constant 0 : i32
    return %arg0, %c0_i32 : i32, i32
  }
  func.func @transform_2(%arg0: i32) -> (i32, i32) {
    %c0_i32 = arith.constant 0 : i32
    %c0_i32_0 = arith.constant 0 : i32
    return %arg0, %c0_i32 : i32, i32
  }
  func.func @transform_3(%arg0: i32) -> (i32, i32) {
    %c0_i32 = arith.constant 0 : i32
    %c0_i32_0 = arith.constant 0 : i32
    return %arg0, %c0_i32 : i32, i32
  }
}

</mosaic_0001>

<bundles_post_ra>
// kernel: tpu_custom_call.1
= control target key start
LH: loop header
LB: loop body
LE: loop exit
PB: predicated region body
PF: predicated region fallthrough
CT: control target
= control target key end

     0   :  { %8 = vsyncpa [#allocation3], 0  ;;  %s268_s0 = inlined_call_operand.hbm [shape: f32[2,16,256], index: 0, kind: input, shape index: {}]   ;;  %s269_s1 = inlined_call_operand.vmem [shape: f32[16,3], index: 1, kind: input, shape index: {}]   ;;  %s270_s2 = inlined_call_operand.vmem [shape: f32[16,1], index: 2, kind: input, shape index: {}]   ;;  %s271_s3 = inlined_call_operand.hbm [shape: f32[16,128], index: 3, kind: output, shape index: {}]  }
   0x1   :  { %9 = vsyncpa [#allocation4], 0  ;;  %s14_s14 = sshll.u32 %s268_s0, 4  ;;  %s217_s15 = smov [#allocation2]   ;;  %s15_s14 = int_to_ptr.hbm [resolvable:$true] %s14_s14 }
   0x2   :  { %s16_s16 = sshll.u32 %s217_s15, 4  ;;  %s218_s17 = smov 256   ;;  %s17_s16 = int_to_ptr.vmem [resolvable:$true] %s16_s16 }
   0x3   :  { %s219_s18 = smov 16  }
   0x4   :  { %22 = dma.hbm_to_vmem [thread:$0]  %s15_s14, 1024, %s17_s16, [#allocation3], %s218_s17, %s218_s17, %s219_s18  }
   0x5   :  { %213 = dma.done.wait [#allocation3], 1024  }
   0x6   :  { %214 = vsyncadd [#allocation3], 4294966272  ;;  %v220_v0 = vmov 2   ;;  %v221_v1 = vmov 1   ;;  %v222_v2 = vmov 0   ;;  %v31_v3 = vld [vmem:[%s269_s1] sm:$0xff] }
   0x7   :  { %160 = vset.pattern.permute.xlu1 %v220_v0  ;;  %159 = vset.pattern.permute.xlu0 %v221_v1  ;;  %v32_v4 = vld [vmem:[%s269_s1 + $0x8] sm:$0xff]  ;;  %v33_v6 = vld [vmem:[%s270_s2] sm:$0xff]  ;;  %s223_s1 = smov 127   ;;  %v63_v13 = vld [vmem:[#allocation2 + $0x10] sm:$0xff]  ;;  %vm89_vm0 = vcmask 1039360   ;;  %vm120_vm1 = vcmask 1031168  }
   0x8   :  { %161 = vset.pattern.permute.xlu2 %v222_v2  ;;  %97 = vperm.xlu1 %160, %v31_v3   ;;  %v34_v5 = vld [vmem:[%s270_s2 + $0x8] sm:$0xff]  ;;  %v61_v7 = vld [vmem:[#allocation2] sm:$0xff]  ;;  %v64_v14 = vld [vmem:[#allocation2 + $0x18] sm:$0xff]  ;;  %s224_s2 = smov 126   ;;  %s225_s26 = smov [#allocation5]  }
   0x9   :  { %66 = vperm.xlu0 %159, %v31_v3   ;;  %49 = vperm.xlu2 %161, %v31_v3   ;;  %v62_v8 = vld [vmem:[#allocation2 + $0x8] sm:$0xff]  ;;  %s133_s27 = sshll.u32 %s225_s26, 4  ;;  %s135_s30 = sshll.u32 %s271_s3, 4  ;;  %s134_s27 = int_to_ptr.vmem [resolvable:$true] %s133_s27  ;;  %s136_s30 = int_to_ptr.hbm [resolvable:$true] %s135_s30 }
   0xa   :  { %s226_s4 = smov 128   ;;  %s227_s5 = smov 8  }
  0x10   :  { %101 = vperm.xlu1 %160, %v32_v4  }
  0x11   :  { %70 = vperm.xlu0 %159, %v32_v4   ;;  %54 = vperm.xlu2 %161, %v32_v4  }
  0x18   :  { %163 = vset.pattern.permute.xlu1 %v222_v2 }
  0x19   :  { %162 = vset.pattern.permute.xlu0 %v222_v2  ;;  %42 = vperm.xlu1 %163, %v34_v5  }
  0x1a   :  { %37 = vperm.xlu0 %162, %v33_v6  }
  0x22   :  { %164 = vset.pattern.permute.xlu0 %v220_v0 }
  0x63   :  { %v50_v23 = vpop.permute.xlu2 %49 }
  0x64   :  { %v57_v30 = vmul.f32 %v61_v7, %v50_v23 }
  0x6b   :  { %v55_v24 = vpop.permute.xlu2 %54 }
  0x6c   :  { %v58_v38 = vmul.f32 %v63_v13, %v55_v24 }
  0x7a   :  { %v98_v12 = vpop.permute.xlu1 %97 }
  0x7b   :  { %v67_v9 = vpop.permute.xlu0 %66  ;;  %v104_v15 = vmul.f32 %v98_v12, %v61_v7  ;;  %v105_v22 = vmul.f32 %v98_v12, %v62_v8 }
  0x7c   :  { %v73_v10 = vmul.f32 %v67_v9, %v61_v7  ;;  %v74_v11 = vmul.f32 %v67_v9, %v62_v8 }
  0x7e   :  { %83 = vrot.lane.b32.xlu1 %v74_v11, %s223_s1  ;;  %81 = vrot.lane.b32.xlu2 %v73_v10, %s223_s1 }
  0x82   :  { %v102_v19 = vpop.permute.xlu1 %101 }
  0x83   :  { %v71_v16 = vpop.permute.xlu0 %70  ;;  %v106_v20 = vmul.f32 %v102_v19, %v63_v13  ;;  %v107_v21 = vmul.f32 %v102_v19, %v64_v14 }
  0x84   :  { %v75_v17 = vmul.f32 %v71_v16, %v63_v13  ;;  %v76_v18 = vmul.f32 %v71_v16, %v64_v14 }
  0x86   :  { %112 = vrot.lane.b32.xlu1 %v104_v15, %s224_s2  ;;  %87 = vrot.lane.b32.xlu0 %v76_v18, %s223_s1 }
  0x87   :  { %85 = vrot.lane.b32.xlu2 %v75_v17, %s223_s1 }
  0x8b   :  { %v43_v26 = vpop.permute.xlu1 %42 }
  0x8c   :  { %v38_v28 = vpop.permute.xlu0 %37  ;;  %v60_v41 = vadd.f32 %v58_v38, %v43_v26 }
  0x8d   :  { %v59_v32 = vadd.f32 %v57_v30, %v38_v28 }
  0x8e   :  { %118 = vrot.lane.b32.xlu1 %v107_v21, %s224_s2  ;;  %116 = vrot.lane.b32.xlu0 %v106_v20, %s224_s2 }
  0x8f   :  { %114 = vrot.lane.b32.xlu2 %v105_v22, %s224_s2 }
  0xd8   :  { %v82_v25 = vpop.permute.xlu2 %81 }
  0xe1   :  { %v86_v27 = vpop.permute.xlu2 %85 }
  0xe9   :  { %v115_v33 = vpop.permute.xlu2 %114 }
  0xf0   :  { %v84_v29 = vpop.permute.xlu1 %83 }
  0xf1   :  { %v90_v31 = vsel %vm89_vm0, %v82_v25, %v84_v29 }
  0xf2   :  { %v94_v34 = vadd.f32 %v90_v31, %v59_v32 }
  0xf8   :  { %v113_v35 = vpop.permute.xlu1 %112  ;;  %v88_v36 = vpop.permute.xlu0 %87 }
  0xf9   :  { %v121_v37 = vsel %vm120_vm1, %v113_v35, %v115_v33  ;;  %v91_v40 = vsel %vm89_vm0, %v86_v27, %v88_v36 }
  0xfa   :  { %v125_v39 = vadd.f32 %v121_v37, %v94_v34  ;;  %v95_v42 = vadd.f32 %v91_v40, %v60_v41 }
  0xfc   :  { %127 = vst [vmem:[#allocation5] sm:$0xff] %v125_v39 }
 0x100   :  { %v119_v43 = vpop.permute.xlu1 %118  ;;  %v117_v44 = vpop.permute.xlu0 %116 }
 0x101   :  { %v122_v45 = vsel %vm120_vm1, %v117_v44, %v119_v43 }
 0x102   :  { %v126_v46 = vadd.f32 %v122_v45, %v95_v42 }
 0x104   :  { %128 = vst [vmem:[#allocation5 + $0x8] sm:$0xff] %v126_v46 }
 0x105   :  { %141 = dma.vmem_to_hbm [thread:$0]  %s134_s27, 256, %s136_s30, [#allocation4], %s226_s4, %s226_s4, %s227_s5  }
 0x106   :  { %215 = dma.done.wait [#allocation4], 256  }
 0x107   :  { %216 = vsyncadd [#allocation4], 4294967040 }
 0x108   :  { %146 = vsyncpa [#allocation3], 1 }
 0x109   :  { %147 = vsyncpa [#allocation4], 1 }

</bundles_post_ra>
